<compile_context>
chip_gen: v6e
topology: v6e:2x2x1
jax: 0.10.0
libtpu: 0.0.40
codegen_flags: <defaults>
</compile_context>

<pallas_src>
import jax
import jax.numpy as jnp
from jax.experimental import pallas as pl
from jax.experimental.pallas import tpu as pltpu

NEG_SLOPE = 0.01   # F.leaky_relu default negative_slope
SUBLANE = 8
HIDDEN = 128       # fc1/fc2 width in the PyTorch module


def _leaky_relu(x):
    return jnp.where(x > 0, x, NEG_SLOPE * x)


def _round_up(x, m):
    return ((x + m - 1) // m) * m


def _cdiv(a, b):
    return (a + b - 1) // b


def kinematic_kernel(s_ref, w1_ref, b1_ref, w2_ref, b2_ref, w3_ref, b3_ref, o_ref):
    # MXU operand dtype follows the prepared weights (bf16 fast path or f32).
    # Accumulation and the bias/leaky_relu elementwise path are always f32.
    mxu_dtype = w1_ref.dtype

    x = s_ref[...].astype(mxu_dtype)

    h1 = jnp.dot(x, w1_ref[...], preferred_element_type=jnp.float32) + b1_ref[...]
    h1 = _leaky_relu(h1)

    h2 = jnp.dot(h1.astype(mxu_dtype), w2_ref[...],
                 preferred_element_type=jnp.float32) + b2_ref[...]
    h2 = _leaky_relu(h2)

    out = jnp.dot(h2.astype(mxu_dtype), w3_ref[...],
                  preferred_element_type=jnp.float32) + b3_ref[...]
    o_ref[...] = out.astype(o_ref.dtype)


def prepare_params(params, mxu_dtype=jnp.bfloat16):
    """One-time (per-parameter-update) preparation of kernel operands.

    Casts weights to the MXU operand dtype (bf16 default: ~3x matmul throughput
    on v5e/v6e/v7x; pass jnp.float32 for bit-tight accuracy). Biases stay f32
    since the bias/leaky_relu path runs in f32 regardless of chip.
    """
    f32 = jnp.float32
    return {
        "w1": params["w1"].astype(mxu_dtype),
        "b1": params["b1"].astype(f32),
        "w2": params["w2"].astype(mxu_dtype),
        "b2": params["b2"].astype(f32),
        "w3": params["w3"].astype(mxu_dtype),
        "b3": params["b3"].astype(f32),
    }


def kinematic_forward(s, prepared, *, block_m=1024):
    """Fused 3-layer MLP forward.

    s: (B, state_size) float32.
    prepared: output of `prepare_params` — w1 (S,H), b1 (1,H), w2 (H,H),
              b2 (1,H), w3 (H,S), b3 (1,S), weights stored transposed relative
              to torch so each layer is x @ W + b.
    block_m: batch tile (rows per grid step). Sweep 1024/2048/4096 on real
             batches; clamped to the batch so small inputs stay cheap.
    """
    B, S = s.shape
    H = prepared["w1"].shape[1]

    # Batch tile: multiple of 8 sublanes, clamped to the batch.
    bm = _round_up(min(block_m, _round_up(B, SUBLANE)), SUBLANE)
    # v7x: ensure >=2 grid steps so the 'parallel' axis shards across both
    # TensorCores (harmless on single-TC v5e/v6e).
    if B > SUBLANE and _cdiv(B, bm) < 2:
        bm = _round_up(_cdiv(B, 2), SUBLANE)
    grid = (_cdiv(B, bm),)

    weight_bytes = sum(int(prepared[k].size) * prepared[k].dtype.itemsize
                       for k in ("w1", "b1", "w2", "b2", "w3", "b3"))
    flops = 2 * B * (S * H + H * H + H * S)
    bytes_accessed = 2 * B * S * s.dtype.itemsize + weight_bytes  # in + out + weights

    out = pl.pallas_call(
        kinematic_kernel,
        out_shape=jax.ShapeDtypeStruct((B, S), s.dtype),
        grid_spec=pltpu.PrefetchScalarGridSpec(
            num_scalar_prefetch=0,
            grid=grid,
            in_specs=[
                pl.BlockSpec((bm, S), lambda i: (i, 0)),   # s tile (streamed)
                pl.BlockSpec((S, H), lambda i: (0, 0)),    # w1 (resident)
                pl.BlockSpec((1, H), lambda i: (0, 0)),    # b1
                pl.BlockSpec((H, H), lambda i: (0, 0)),    # w2
                pl.BlockSpec((1, H), lambda i: (0, 0)),    # b2
                pl.BlockSpec((H, S), lambda i: (0, 0)),    # w3
                pl.BlockSpec((1, S), lambda i: (0, 0)),    # b3
            ],
            out_specs=pl.BlockSpec((bm, S), lambda i: (i, 0)),
        ),
        compiler_params=pltpu.CompilerParams(
            dimension_semantics=("parallel",),      # batch tiles shard across TCs
            vmem_limit_bytes=32 * 1024 * 1024,      # tiny real footprint; v7x-safe
        ),
        cost_estimate=pl.CostEstimate(
            flops=flops, transcendentals=0, bytes_accessed=bytes_accessed),
    )(s, prepared["w1"], prepared["b1"], prepared["w2"], prepared["b2"],
      prepared["w3"], prepared["b3"])
    return out


def init_params(key, state_size, hidden=HIDDEN):
    """Deterministic init mimicking torch Linear (uniform +/- 1/sqrt(fan_in))."""
    ks = jax.random.split(key, 6)

    def lin(kw, kb, fan_in, fan_out):
        bound = 1.0 / jnp.sqrt(fan_in)
        w = jax.random.uniform(kw, (fan_in, fan_out), jnp.float32, -bound, bound)
        b = jax.random.uniform(kb, (1, fan_out), jnp.float32, -bound, bound)
        return w, b

    w1, b1 = lin(ks[0], ks[1], state_size, hidden)
    w2, b2 = lin(ks[2], ks[3], hidden, hidden)
    w3, b3 = lin(ks[4], ks[5], hidden, state_size)
    return {"w1": w1, "b1": b1, "w2": w2, "b2": b2, "w3": w3, "b3": b3}


def reference_forward(s, p):
    h1 = _leaky_relu(s @ p["w1"] + p["b1"])
    h2 = _leaky_relu(h1 @ p["w2"] + p["b2"])
    return h2 @ p["w3"] + p["b3"]


if __name__ == "__main__":
    key = jax.random.PRNGKey(0)
    k_param, k_in = jax.random.split(key)

    batch, state_size = 8, 8  # small shapes consistent with the module
    params = init_params(k_param, state_size)
    s = jax.random.normal(k_in, (batch, state_size), jnp.float32)
    ref = reference_forward(s, params)

    # f32 MXU operands: bit-tight vs the pure-JAX reference.
    p_f32 = prepare_params(params, mxu_dtype=jnp.float32)
    out = jax.block_until_ready(kinematic_forward(s, p_f32))
    assert out.shape == (batch, state_size)
    assert jnp.allclose(out, ref, atol=1e-5, rtol=1e-5), "mismatch (f32 path)"

    # bf16 MXU operands (fast path on v5e/v6e/v7x): looser tolerance.
    p_bf16 = prepare_params(params, mxu_dtype=jnp.bfloat16)
    out_bf = jax.block_until_ready(kinematic_forward(s, p_bf16))
    assert jnp.allclose(out_bf, ref, atol=5e-2, rtol=5e-2), "mismatch (bf16 path)"

    # Ragged batch: exercises the >=2-grid-step split and the partial last block.
    s2 = jax.random.normal(k_in, (37, state_size), jnp.float32)
    out2 = jax.block_until_ready(kinematic_forward(s2, p_f32))
    ref2 = reference_forward(s2, params)
    assert jnp.allclose(out2, ref2, atol=1e-5, rtol=1e-5), "mismatch (ragged batch)"

    print("KERNEL_OK")
</pallas_src>

<mosaic_0001>
module attributes {stable_mosaic.version = 11 : i64} {
  func.func @kinematic_kernel(%arg0: i32, %arg1: memref<8x8xf32, #tpu.memory_space<vmem>>, %arg2: memref<8x128xf32, #tpu.memory_space<vmem>>, %arg3: memref<1x128xf32, #tpu.memory_space<vmem>>, %arg4: memref<128x128xf32, #tpu.memory_space<vmem>>, %arg5: memref<1x128xf32, #tpu.memory_space<vmem>>, %arg6: memref<128x8xf32, #tpu.memory_space<vmem>>, %arg7: memref<1x8xf32, #tpu.memory_space<vmem>>, %arg8: memref<8x8xf32, #tpu.memory_space<vmem>>) attributes {dimension_semantics = [#tpu.dimension_semantics<parallel>], iteration_bounds = array<i64: 1>, scalar_prefetch = 0 : i64, scratch_operands = 0 : i64, tpu.core_type = #tpu.core_type<tc>, window_params = [{transform_indices = @transform_0, window_bounds = array<i64: 8, 8>}, {pipeline_mode = #tpu.pipeline_mode<synchronous>, transform_indices = @transform_1, window_bounds = array<i64: 8, 128>}, {pipeline_mode = #tpu.pipeline_mode<synchronous>, transform_indices = @transform_2, window_bounds = array<i64: 1, 128>}, {pipeline_mode = #tpu.pipeline_mode<synchronous>, transform_indices = @transform_3, window_bounds = array<i64: 128, 128>}, {pipeline_mode = #tpu.pipeline_mode<synchronous>, transform_indices = @transform_4, window_bounds = array<i64: 1, 128>}, {pipeline_mode = #tpu.pipeline_mode<synchronous>, transform_indices = @transform_5, window_bounds = array<i64: 128, 8>}, {pipeline_mode = #tpu.pipeline_mode<synchronous>, transform_indices = @transform_6, window_bounds = array<i64: 1, 8>}, {transform_indices = @transform_7, window_bounds = array<i64: 8, 8>}]} {
    %c0 = arith.constant 0 : index
    %c0_0 = arith.constant 0 : index
    %0 = vector.load %arg1[%c0, %c0_0] : memref<8x8xf32, #tpu.memory_space<vmem>>, vector<8x8xf32>
    %c0_1 = arith.constant 0 : index
    %c0_2 = arith.constant 0 : index
    %1 = vector.load %arg2[%c0_1, %c0_2] : memref<8x128xf32, #tpu.memory_space<vmem>>, vector<8x128xf32>
    %cst = arith.constant dense<0.000000e+00> : vector<8x128xf32>
    %2 = tpu.matmul %0, %1, %cst {dimension_numbers = #tpu.dot_dimension_numbers<[1], [0], [0], [1], [0, 0, 1, 1], [], []>} : vector<8x8xf32>, vector<8x128xf32>, vector<8x128xf32> -> vector<8x128xf32>
    %c0_3 = arith.constant 0 : index
    %c0_4 = arith.constant 0 : index
    %3 = vector.load %arg3[%c0_3, %c0_4] : memref<1x128xf32, #tpu.memory_space<vmem>>, vector<1x128xf32>
    %4 = vector.broadcast %3 : vector<1x128xf32> to vector<8x128xf32>
    %5 = arith.addf %2, %4 : vector<8x128xf32>
    %cst_5 = arith.constant 0.000000e+00 : f32
    %6 = vector.broadcast %cst_5 : f32 to vector<8x128xf32>
    %7 = arith.cmpf ogt, %5, %6 : vector<8x128xf32>
    %cst_6 = arith.constant 0.00999999977 : f32
    %8 = vector.broadcast %cst_6 : f32 to vector<8x128xf32>
    %9 = arith.mulf %8, %5 : vector<8x128xf32>
    %10 = arith.select %7, %5, %9 : vector<8x128xi1>, vector<8x128xf32>
    %c0_7 = arith.constant 0 : index
    %c0_8 = arith.constant 0 : index
    %11 = vector.load %arg4[%c0_7, %c0_8] : memref<128x128xf32, #tpu.memory_space<vmem>>, vector<128x128xf32>
    %cst_9 = arith.constant dense<0.000000e+00> : vector<8x128xf32>
    %12 = tpu.matmul %10, %11, %cst_9 {dimension_numbers = #tpu.dot_dimension_numbers<[1], [0], [0], [1], [0, 0, 1, 1], [], []>} : vector<8x128xf32>, vector<128x128xf32>, vector<8x128xf32> -> vector<8x128xf32>
    %c0_10 = arith.constant 0 : index
    %c0_11 = arith.constant 0 : index
    %13 = vector.load %arg5[%c0_10, %c0_11] : memref<1x128xf32, #tpu.memory_space<vmem>>, vector<1x128xf32>
    %14 = vector.broadcast %13 : vector<1x128xf32> to vector<8x128xf32>
    %15 = arith.addf %12, %14 : vector<8x128xf32>
    %cst_12 = arith.constant 0.000000e+00 : f32
    %16 = vector.broadcast %cst_12 : f32 to vector<8x128xf32>
    %17 = arith.cmpf ogt, %15, %16 : vector<8x128xf32>
    %cst_13 = arith.constant 0.00999999977 : f32
    %18 = vector.broadcast %cst_13 : f32 to vector<8x128xf32>
    %19 = arith.mulf %18, %15 : vector<8x128xf32>
    %20 = arith.select %17, %15, %19 : vector<8x128xi1>, vector<8x128xf32>
    %c0_14 = arith.constant 0 : index
    %c0_15 = arith.constant 0 : index
    %21 = vector.load %arg6[%c0_14, %c0_15] : memref<128x8xf32, #tpu.memory_space<vmem>>, vector<128x8xf32>
    %cst_16 = arith.constant dense<0.000000e+00> : vector<8x8xf32>
    %22 = tpu.matmul %20, %21, %cst_16 {dimension_numbers = #tpu.dot_dimension_numbers<[1], [0], [0], [1], [0, 0, 1, 1], [], []>} : vector<8x128xf32>, vector<128x8xf32>, vector<8x8xf32> -> vector<8x8xf32>
    %c0_17 = arith.constant 0 : index
    %c0_18 = arith.constant 0 : index
    %23 = vector.load %arg7[%c0_17, %c0_18] : memref<1x8xf32, #tpu.memory_space<vmem>>, vector<1x8xf32>
    %24 = vector.broadcast %23 : vector<1x8xf32> to vector<8x8xf32>
    %25 = arith.addf %22, %24 : vector<8x8xf32>
    %c0_19 = arith.constant 0 : index
    %c0_20 = arith.constant 0 : index
    %26 = vector.load %arg8[%c0_19, %c0_20] : memref<8x8xf32, #tpu.memory_space<vmem>>, vector<8x8xf32>
    tpu.vector_store %arg8[%c0_19, %c0_20], %25 {strides = array<i32>} : memref<8x8xf32, #tpu.memory_space<vmem>>, vector<8x8xf32>,
    return
  }
  func.func @transform_0(%arg0: i32) -> (i32, i32) {
    %c0_i32 = arith.constant 0 : i32
    %c0_i32_0 = arith.constant 0 : i32
    return %arg0, %c0_i32 : i32, i32
  }
  func.func @transform_1(%arg0: i32) -> (i32, i32) {
    %c0_i32 = arith.constant 0 : i32
    %c0_i32_0 = arith.constant 0 : i32
    %c0_i32_1 = arith.constant 0 : i32
    return %c0_i32, %c0_i32_0 : i32, i32
  }
  func.func @transform_2(%arg0: i32) -> (i32, i32) {
    %c0_i32 = arith.constant 0 : i32
    %c0_i32_0 = arith.constant 0 : i32
    %c0_i32_1 = arith.constant 0 : i32
    return %c0_i32, %c0_i32_0 : i32, i32
  }
  func.func @transform_3(%arg0: i32) -> (i32, i32) {
    %c0_i32 = arith.constant 0 : i32
    %c0_i32_0 = arith.constant 0 : i32
    %c0_i32_1 = arith.constant 0 : i32
    return %c0_i32, %c0_i32_0 : i32, i32
  }
  func.func @transform_4(%arg0: i32) -> (i32, i32) {
    %c0_i32 = arith.constant 0 : i32
    %c0_i32_0 = arith.constant 0 : i32
    %c0_i32_1 = arith.constant 0 : i32
    return %c0_i32, %c0_i32_0 : i32, i32
  }
  func.func @transform_5(%arg0: i32) -> (i32, i32) {
    %c0_i32 = arith.constant 0 : i32
    %c0_i32_0 = arith.constant 0 : i32
    %c0_i32_1 = arith.constant 0 : i32
    return %c0_i32, %c0_i32_0 : i32, i32
  }
  func.func @transform_6(%arg0: i32) -> (i32, i32) {
    %c0_i32 = arith.constant 0 : i32
    %c0_i32_0 = arith.constant 0 : i32
    %c0_i32_1 = arith.constant 0 : i32
    return %c0_i32, %c0_i32_0 : i32, i32
  }
  func.func @transform_7(%arg0: i32) -> (i32, i32) {
    %c0_i32 = arith.constant 0 : i32
    %c0_i32_0 = arith.constant 0 : i32
    return %arg0, %c0_i32 : i32, i32
  }
}

</mosaic_0001>

<bundles_post_ra>
// kernel: tpu_custom_call.1
= control target key start
LH: loop header
LB: loop body
LE: loop exit
PB: predicated region body
PF: predicated region fallthrough
CT: control target
= control target key end

     0   :  { %12 = vsyncpa [#allocation3], 0  ;;  %s729_s0 = inlined_call_operand.vmem [shape: f32[8,8], index: 0, kind: input, shape index: {}]   ;;  %s730_s1 = inlined_call_operand.hbm [shape: f32[8,128], index: 1, kind: input, shape index: {}]   ;;  %s731_s2 = inlined_call_operand.vmem [shape: f32[1,128], index: 2, kind: input, shape index: {}]   ;;  %s732_s3 = inlined_call_operand.vmem [shape: f32[128,128], index: 3, kind: input, shape index: {}]   ;;  %s733_s4 = inlined_call_operand.hbm [shape: f32[1,128], index: 4, kind: input, shape index: {}]   ;;  %s734_s5 = inlined_call_operand.vmem [shape: f32[128,8], index: 5, kind: input, shape index: {}]   ;;  %s735_s6 = inlined_call_operand.vmem [shape: f32[1,8], index: 6, kind: input, shape index: {}]   ;;  %s736_s7 = inlined_call_operand.hbm [shape: f32[8,8], index: 7, kind: output, shape index: {}]  }
   0x1   :  { %13 = vsyncpa [#allocation6], 0 }
   0x2   :  { %14 = vsyncpa [#allocation4], 0  ;;  %s529_s24 = smov [#allocation2]   ;;  %s530_s26 = smov [#allocation5]  }
   0x3   :  { %s23_s25 = sshll.u32 %s529_s24, 4  ;;  %s37_s27 = sshll.u32 %s530_s26, 4  ;;  %s24_s25 = int_to_ptr.vmem [resolvable:$true] %s23_s25  ;;  %s38_s27 = int_to_ptr.vmem [resolvable:$true] %s37_s27 }
   0x4   :  { %s471_s28 = scalar_lea.vmem %s24_s25, 128  ;;  %p476_p1 = scmp.lt.s32.totalorder %s24_s25, %s24_s25 }
   0x5   :  { %p472_p0 = scmp.ne.s32.totalorder %s24_s25, %s471_s28  ;;  %p477_p2 = scmp.lt.s32.totalorder %s471_s28, %s471_s28 }
   0x7   :  { %p478_p3 = por %p477_p2, %p476_p1 }
   0x9   :  { %p479_p4 = pnand %p478_p3, %p472_p0 }
   0xb   :  { %482 = shalt.err (!%p479_p4)
}
   0xc   :  { %26 = dma.hbm_to_vmem [thread:$0]  %s730_s1, 128, %s24_s25, [#allocation3]  }
   0xd   :  { %s491_s8 = scalar_lea.vmem %s38_s27, 16  ;;  %s495_s9 = scalar_lea.vmem %s38_s27, 32 }
   0xe   :  { %p492_p5 = scmp.ne.s32.totalorder %s38_s27, %s491_s8  ;;  %p496_p6 = scmp.lt.s32.totalorder %s38_s27, %s38_s27 }
   0xf   :  { %p497_p7 = scmp.lt.s32.totalorder %s495_s9, %s491_s8 }
  0x11   :  { %p498_p8 = por %p497_p7, %p496_p6 }
  0x13   :  { %p499_p9 = pnand %p498_p8, %p492_p5 }
  0x15   :  { %502 = shalt.err (!%p499_p9)
}
  0x16   :  { %40 = dma.hbm_to_vmem [thread:$0]  %s733_s4, 16, %s38_s27, [#allocation6]  }
  0x17   :  { %523 = dma.done.wait [#allocation3], 128  }
  0x18   :  { %524 = vsyncadd [#allocation3], 4294967168 }
  0x19   :  { %525 = dma.done.wait [#allocation6], 16  }
  0x1a   :  { %526 = vsyncadd [#allocation6], 4294967280  ;;  %v531_v0 = vmov 0.0   ;;  %vm532_vm0 = vmmov 0   ;;  %vm60_vm1 = vcmask 64512   ;;  %v52_v1 = vld [vmem:[#allocation2] sm:$0xff] }
  0x1b   :  { %383 = vmatprep.subr.mxu0 %v531_v0  ;;  %385 = vmatprep.mubr.msk.f32.mxu0 %vm532_vm0, %v531_v0  ;;  %v51_v2 = vld [vmem:[%s729_s0] sm:$0xff]  ;;  %v152_v3 = vld [vmem:[%s732_s3 + $0x78] sm:$0xff]  ;;  %v151_v4 = vld [vmem:[%s732_s3 + $0x70] sm:$0xff]  ;;  %s533_s24 = smov [#allocation7]  }
  0x1c   :  { %388 = vmatprep.subr.mxu1 %v531_v0  ;;  %420 = vmatprep.mubr.msk.f32.mxu1 %vm532_vm0, %v531_v0  ;;  %v150_v5 = vld [vmem:[%s732_s3 + $0x68] sm:$0xff]  ;;  %v149_v6 = vld [vmem:[%s732_s3 + $0x60] sm:$0xff]  ;;  %v148_v7 = vld [vmem:[%s732_s3 + $0x58] sm:$0xff]  ;;  %s333_s25 = sshll.u32 %s533_s24, 4  ;;  %s334_s25 = int_to_ptr.vmem [resolvable:$true] %s333_s25 }
  0x1d   :  { %384 = vmatpush3.msra.mxu0 %v52_v1  ;;  %389 = vmatpush3.msra.mxu1 %v152_v3  ;;  %v147_v8 = vld [vmem:[%s732_s3 + $0x50] sm:$0xff]  ;;  %v146_v9 = vld [vmem:[%s732_s3 + $0x48] sm:$0xff]  ;;  %v145_v10 = vld [vmem:[%s732_s3 + $0x40] sm:$0xff]  ;;  %p508_p11 = scmp.lt.s32.totalorder %s334_s25, %s334_s25 }
  0x1e   :  { %386 = vmatmul.mubr.msk.f32.vlgmr.msra.gmra.mxu0 %vm60_vm1, %v51_v2  ;;  %390 = vmatprep.subr.mxu1 %v531_v0  ;;  %v144_v11 = vld [vmem:[%s732_s3 + $0x38] sm:$0xff]  ;;  %v143_v12 = vld [vmem:[%s732_s3 + $0x30] sm:$0xff]  ;;  %v142_v13 = vld [vmem:[%s732_s3 + $0x28] sm:$0xff] }
  0x1f   :  { %391 = vmatpush3.msra.mxu1 %v151_v4  ;;  %423 = vmatprep.subr.mxu0 %v531_v0  ;;  %v141_v14 = vld [vmem:[%s732_s3 + $0x20] sm:$0xff]  ;;  %v140_v15 = vld [vmem:[%s732_s3 + $0x18] sm:$0xff]  ;;  %v139_v16 = vld [vmem:[%s732_s3 + $0x10] sm:$0xff] }
  0x20   :  { %392 = vmatprep.subr.mxu1 %v531_v0  ;;  %455 = vmatprep.mubr.msk.f32.mxu0 %vm532_vm0, %v531_v0  ;;  %v138_v17 = vld [vmem:[%s732_s3 + $0x8] sm:$0xff]  ;;  %v137_v18 = vld [vmem:[%s732_s3] sm:$0xff]  ;;  %v248_v19 = vld [vmem:[%s734_s5 + $0x78] sm:$0xff] }
  0x21   :  { %393 = vmatpush3.msra.mxu1 %v150_v5  ;;  %v247_v20 = vld [vmem:[%s734_s5 + $0x70] sm:$0xff]  ;;  %424 = vmatpush3.msra.mxu0 %v248_v19  ;;  %v246_v21 = vld [vmem:[%s734_s5 + $0x68] sm:$0xff]  ;;  %v245_v22 = vld [vmem:[%s734_s5 + $0x60] sm:$0xff] }
  0x22   :  { %394 = vmatprep.subr.mxu1 %v531_v0  ;;  %425 = vmatprep.subr.mxu0 %v531_v0  ;;  %v244_v23 = vld [vmem:[%s734_s5 + $0x58] sm:$0xff]  ;;  %v243_v24 = vld [vmem:[%s734_s5 + $0x50] sm:$0xff]  ;;  %v242_v25 = vld [vmem:[%s734_s5 + $0x48] sm:$0xff] }
  0x23   :  { %395 = vmatpush3.msra.mxu1 %v149_v6  ;;  %426 = vmatpush3.msra.mxu0 %v247_v20  ;;  %v241_v26 = vld [vmem:[%s734_s5 + $0x40] sm:$0xff]  ;;  %v240_v27 = vld [vmem:[%s734_s5 + $0x38] sm:$0xff]  ;;  %v239_v28 = vld [vmem:[%s734_s5 + $0x30] sm:$0xff] }
  0x24   :  { %396 = vmatprep.subr.mxu1 %v531_v0  ;;  %427 = vmatprep.subr.mxu0 %v531_v0  ;;  %v238_v29 = vld [vmem:[%s734_s5 + $0x28] sm:$0xff]  ;;  %v237_v30 = vld [vmem:[%s734_s5 + $0x20] sm:$0xff]  ;;  %v236_v31 = vld [vmem:[%s734_s5 + $0x18] sm:$0xff] }
  0x25   :  { %397 = vmatpush3.msra.mxu1 %v148_v7  ;;  %428 = vmatpush3.msra.mxu0 %v246_v21  ;;  %v343_v32 = vld [vmem:[%s731_s2] ss:$0 sm:$0xff]  ;;  %v235_v38 = vld [vmem:[%s734_s5 + $0x10] sm:$0xff]  ;;  %v234_v39 = vld [vmem:[%s734_s5 + $0x8] sm:$0xff] }
  0x26   :  { %398 = vmatprep.subr.mxu1 %v531_v0  ;;  %429 = vmatprep.subr.mxu0 %v531_v0  ;;  %v233_v40 = vld [vmem:[%s734_s5] sm:$0xff]  ;;  %v345_v41 = vld [vmem:[#allocation5] ss:$0 sm:$0xff]  ;;  %s503_s5 = scalar_lea.vmem %s334_s25, 128 }
  0x27   :  { %399 = vmatpush3.msra.mxu1 %v147_v8  ;;  %430 = vmatpush3.msra.mxu0 %v245_v22  ;;  %v346_v47 = vld [vmem:[%s735_s6] ss:$0 sm:$0xff]  ;;  %p504_p10 = scmp.ne.s32.totalorder %s334_s25, %s503_s5  ;;  %p509_p12 = scmp.lt.s32.totalorder %s503_s5, %s503_s5 }
  0x28   :  { %400 = vmatprep.subr.mxu1 %v531_v0  ;;  %431 = vmatprep.subr.mxu0 %v531_v0 }
  0x29   :  { %401 = vmatpush3.msra.mxu1 %v146_v9  ;;  %432 = vmatpush3.msra.mxu0 %v244_v23  ;;  %p510_p13 = por %p509_p12, %p508_p11 }
  0x2a   :  { %402 = vmatprep.subr.mxu1 %v531_v0  ;;  %433 = vmatprep.subr.mxu0 %v531_v0 }
  0x2b   :  { %403 = vmatpush3.msra.mxu1 %v145_v10  ;;  %434 = vmatpush3.msra.mxu0 %v243_v24  ;;  %p511_p0 = pnand %p510_p13, %p504_p10 }
  0x2c   :  { %404 = vmatprep.subr.mxu1 %v531_v0  ;;  %435 = vmatprep.subr.mxu0 %v531_v0 }
  0x2d   :  { %405 = vmatpush3.msra.mxu1 %v144_v11  ;;  %436 = vmatpush3.msra.mxu0 %v242_v25 }
  0x2e   :  { %406 = vmatprep.subr.mxu1 %v531_v0  ;;  %437 = vmatprep.subr.mxu0 %v531_v0 }
  0x2f   :  { %407 = vmatpush3.msra.mxu1 %v143_v12  ;;  %438 = vmatpush3.msra.mxu0 %v241_v26 }
  0x30   :  { %408 = vmatprep.subr.mxu1 %v531_v0  ;;  %439 = vmatprep.subr.mxu0 %v531_v0 }
  0x31   :  { %409 = vmatpush3.msra.mxu1 %v142_v13  ;;  %440 = vmatpush3.msra.mxu0 %v240_v27 }
  0x32   :  { %410 = vmatprep.subr.mxu1 %v531_v0  ;;  %441 = vmatprep.subr.mxu0 %v531_v0 }
  0x33   :  { %411 = vmatpush3.msra.mxu1 %v141_v14  ;;  %442 = vmatpush3.msra.mxu0 %v239_v28 }
  0x34   :  { %412 = vmatprep.subr.mxu1 %v531_v0  ;;  %443 = vmatprep.subr.mxu0 %v531_v0 }
  0x35   :  { %413 = vmatpush3.msra.mxu1 %v140_v15  ;;  %444 = vmatpush3.msra.mxu0 %v238_v29 }
  0x36   :  { %414 = vmatprep.subr.mxu1 %v531_v0  ;;  %445 = vmatprep.subr.mxu0 %v531_v0 }
  0x37   :  { %415 = vmatpush3.msra.mxu1 %v139_v16  ;;  %446 = vmatpush3.msra.mxu0 %v237_v30 }
  0x38   :  { %416 = vmatprep.subr.mxu1 %v531_v0  ;;  %447 = vmatprep.subr.mxu0 %v531_v0 }
  0x39   :  { %417 = vmatpush3.msra.mxu1 %v138_v17  ;;  %448 = vmatpush3.msra.mxu0 %v236_v31 }
  0x3a   :  { %418 = vmatprep.subr.mxu1 %v531_v0  ;;  %449 = vmatprep.subr.mxu0 %v531_v0 }
  0x3b   :  { %419 = vmatpush3.msra.mxu1 %v137_v18  ;;  %450 = vmatpush3.msra.mxu0 %v235_v38 }
  0x3c   :  { %451 = vmatprep.subr.mxu0 %v531_v0 }
  0x3d   :  { %452 = vmatpush3.msra.mxu0 %v234_v39 }
  0x3e   :  { %453 = vmatprep.subr.mxu0 %v531_v0 }
  0x3f   :  { %454 = vmatpush3.msra.mxu0 %v233_v40 }
  0xde   :  { %v130_v33 = vpop.f32.mrf.mxu0 }
  0xdf   :  { %v131_v34 = vadd.f32 %v343_v32, %v130_v33 }
  0xe0   :  { %v387_v35 = vpop.f32.mrf.mxu0 }
  0xe1   :  { %v135_v36 = vmul.f32 0.01, %v131_v34  ;;  %vm134_vm2 = vcmp.gt.f32.partialorder %v131_v34, 0.0 }
  0xe3   :  { %v136_v37 = vsel %vm134_vm2, %v131_v34, %v135_v36 }
  0xe4   :  { %421 = vmatmul.mubr.f32.vlgmr.msra.gmra.mxu1 %v136_v37 }
 0x1a4   :  { %v226_v42 = vpop.f32.mrf.mxu1 }
 0x1a5   :  { %v227_v43 = vadd.f32 %v345_v41, %v226_v42 }
 0x1a6   :  { %v422_v44 = vpop.f32.mrf.mxu1 }
 0x1a7   :  { %vm230_vm3 = vcmp.gt.f32.partialorder %v227_v43, 0.0  ;;  %v231_v45 = vmul.f32 0.01, %v227_v43 }
 0x1a9   :  { %v232_v46 = vsel %vm230_vm3, %v227_v43, %v231_v45 }
 0x1aa   :  { %456 = vmatmul.mubr.f32.vlgmr.msra.gmra.mxu0 %v232_v46 }
 0x26a   :  { %v322_v48 = vpop.f32.mrf.mxu0 }
 0x26b   :  { %v323_v49 = vadd.f32 %v346_v47, %v322_v48 }
 0x26c   :  { %v457_v50 = vpop.f32.mrf.mxu0 }
 0x26d   :  { %326 = vst.msk [vmem:[#allocation7] sm:$0xff] %vm60_vm1, %v323_v49 }
 0x26e   :  { %514 = shalt.err (!%p511_p0)
}
 0x26f   :  { %336 = dma.vmem_to_hbm [thread:$0]  %s334_s25, 128, %s736_s7, [#allocation4]  }
 0x270   :  { %527 = dma.done.wait [#allocation4], 128  }
 0x271   :  { %528 = vsyncadd [#allocation4], 4294967168 }
 0x272   :  { %340 = vsyncpa [#allocation3], 1 }
 0x273   :  { %341 = vsyncpa [#allocation6], 1 }
 0x274   :  { %342 = vsyncpa [#allocation4], 1 }

</bundles_post_ra>
